<compile_context>
chip_gen: v7x
topology: tpu7x:2x2x1
jax: 0.10.0
libtpu: 0.0.40
codegen_flags: <defaults>
</compile_context>

<pallas_src>
from functools import partial

import numpy as np
import jax
import jax.numpy as jnp
from jax.experimental import pallas as pl
from jax.experimental.pallas import tpu as pltpu


# ---------------------------------------------------------------------------
# Kernel 1: 1x1x1 Conv3d (+ bias) as a channel GEMM with lane-dense output.
#   x block : (1, Cin, S)   with S = D*H*W on the lane axis
#   w       : (Cout, Cin)
#   bias    : (Cout, 1)
#   out     : (1, Cout, S)
# ---------------------------------------------------------------------------
def _conv1x1_bias_kernel(x_ref, w_ref, b_ref, o_ref):
    x = x_ref[0]                                                    # (Cin, S)
    y = jnp.dot(w_ref[...], x, preferred_element_type=jnp.float32)  # (Cout, S)
    o_ref[0] = y + b_ref[...]                                       # bias bcast


def conv1x1_bias(x_ncs, w, b):
    """x_ncs: (B, Cin, S) f32; w: (Cout, Cin); b: (Cout,). Returns (B, Cout, S)."""
    B, Cin, S = x_ncs.shape
    Cout = w.shape[0]
    return pl.pallas_call(
        _conv1x1_bias_kernel,
        out_shape=jax.ShapeDtypeStruct((B, Cout, S), jnp.float32),
        grid=(B,),
        in_specs=[
            pl.BlockSpec((1, Cin, S), lambda i: (i, 0, 0)),
            pl.BlockSpec((Cout, Cin), lambda i: (0, 0)),
            pl.BlockSpec((Cout, 1), lambda i: (0, 0)),
        ],
        out_specs=pl.BlockSpec((1, Cout, S), lambda i: (i, 0, 0)),
        compiler_params=pltpu.CompilerParams(dimension_semantics=("parallel",)),
    )(x_ncs.astype(jnp.float32),
      w.astype(jnp.float32),
      b.reshape(Cout, 1).astype(jnp.float32))


# ---------------------------------------------------------------------------
# Kernel 2: trilinear upsample (align_corners=False) per (batch, channel)
# slice as two lane-dense matmuls:
#   z1 = y (D, H*W) @ MHW^T (H*W, sH*sW)        -> (D, sH*sW)
#   z  = MD (sD, D) @ z1                        -> (sD, sH*sW)
# ---------------------------------------------------------------------------
def _upsample_kernel(y_ref, mhwT_ref, md_ref, o_ref):
    z1 = jnp.dot(y_ref[0], mhwT_ref[...], preferred_element_type=jnp.float32)
    o_ref[0] = jnp.dot(md_ref[...], z1, preferred_element_type=jnp.float32)


def _linear_interp_matrix(out_size, in_size):
    """PyTorch F.interpolate linear weights, align_corners=False (numpy)."""
    # For integer scale factors in/out == 1/scale_factor, matching nn.Upsample.
    scale = in_size / out_size
    o = np.arange(out_size, dtype=np.float64)
    src = (o + 0.5) * scale - 0.5
    src = np.maximum(src, 0.0)
    i0 = np.minimum(np.floor(src).astype(np.int64), in_size - 1)
    i1 = np.minimum(i0 + 1, in_size - 1)
    w1 = src - i0
    w0 = 1.0 - w1
    m = np.zeros((out_size, in_size), np.float32)
    m[np.arange(out_size), i0] += w0.astype(np.float32)
    m[np.arange(out_size), i1] += w1.astype(np.float32)
    return m


def trilinear_matrices(D, H, W, scale):
    """Returns (MD (sD, D), MHW^T (H*W, sH*sW)) as numpy float32."""
    sD, sH, sW = D * scale, H * scale, W * scale
    md = _linear_interp_matrix(sD, D)
    mh = _linear_interp_matrix(sH, H)
    mw = _linear_interp_matrix(sW, W)
    mhwT = np.kron(mh, mw).T.copy()            # (H*W, sH*sW)
    return md, mhwT


def upsample_trilinear(y, D, H, W, scale):
    """y: (B, Cout, D*H*W) f32 -> (B, Cout, sD, sH, sW)."""
    B, Cout, S = y.shape
    assert S == D * H * W
    sD, sH, sW = D * scale, H * scale, W * scale
    md_np, mhwT_np = trilinear_matrices(D, H, W, scale)
    y2 = y.reshape(B * Cout, D, H * W)          # free XLA reshape (contiguous)
    out = pl.pallas_call(
        _upsample_kernel,
        out_shape=jax.ShapeDtypeStruct((B * Cout, sD, sH * sW), jnp.float32),
        grid=(B * Cout,),
        in_specs=[
            pl.BlockSpec((1, D, H * W), lambda i: (i, 0, 0)),
            pl.BlockSpec((H * W, sH * sW), lambda i: (0, 0)),
            pl.BlockSpec((sD, D), lambda i: (0, 0)),
        ],
        out_specs=pl.BlockSpec((1, sD, sH * sW), lambda i: (i, 0, 0)),
        compiler_params=pltpu.CompilerParams(dimension_semantics=("parallel",)),
    )(y2, jnp.asarray(mhwT_np), jnp.asarray(md_np))
    return out.reshape(B, Cout, sD, sH, sW)


# ---------------------------------------------------------------------------
# UnetDsv3 forward:  nn.Conv3d(in, out, k=1, s=1, p=0)  ->  nn.Upsample(
#   scale_factor, mode='trilinear', align_corners=False)
# ---------------------------------------------------------------------------
# TODO(synk): non-integer scale_factor (PyTorch floor()s the output size and
# uses the provided scale for source-index math) is not wired up here.
def unet_dsv3_forward(x, w, b, scale_factor):
    """x: (B, Cin, D, H, W) NCDHW (torch layout, already channel-major /
    spatial-minor, i.e. the lane-dense layout the kernels want)."""
    B, Cin, D, H, W = x.shape
    S = D * H * W
    y = conv1x1_bias(x.reshape(B, Cin, S), w, b)        # (B, Cout, S)
    return upsample_trilinear(y, D, H, W, scale_factor)  # (B, Cout, sD, sH, sW)


if __name__ == "__main__":
    key = jax.random.PRNGKey(0)
    B, C_IN, C_OUT, D, H, W, SCALE = 2, 8, 4, 16, 16, 16, 2

    kx, kw, kb = jax.random.split(key, 3)
    x = jax.random.normal(kx, (B, C_IN, D, H, W), jnp.float32)   # NCDHW input
    bound = 1.0 / np.sqrt(C_IN)   # torch Conv3d default init, kernel_size=1
    w = jax.random.uniform(kw, (C_OUT, C_IN), jnp.float32, -bound, bound)
    b = jax.random.uniform(kb, (C_OUT,), jnp.float32, -bound, bound)

    out = unet_dsv3_forward(x, w, b, SCALE)
    jax.block_until_ready(out)

    assert out.shape == (B, C_OUT, D * SCALE, H * SCALE, W * SCALE), out.shape
    assert bool(jnp.all(jnp.isfinite(out)))

    # Pure-JAX reference (same interpolation matrices) for a correctness check.
    md_np, mhwT_np = trilinear_matrices(D, H, W, SCALE)
    y_ref = jnp.einsum('oi,bidhw->bodhw', w, x) + b[None, :, None, None, None]
    t = y_ref.reshape(B, C_OUT, D, H * W) @ jnp.asarray(mhwT_np)     # (B,C,D,sHW)
    ref = jnp.einsum('ad,bcds->bcas', jnp.asarray(md_np), t)
    ref = ref.reshape(B, C_OUT, D * SCALE, H * SCALE, W * SCALE)
    np.testing.assert_allclose(np.asarray(out), np.asarray(ref),
                               rtol=1e-4, atol=1e-4)

    print("KERNEL_OK")
</pallas_src>

<mosaic_0001>
module attributes {stable_mosaic.version = 11 : i64} {
  func.func @_conv1x1_bias_kernel(%arg0: i32, %arg1: memref<1x8x4096xf32, #tpu.memory_space<vmem>>, %arg2: memref<4x8xf32, #tpu.memory_space<vmem>>, %arg3: memref<4x1xf32, #tpu.memory_space<vmem>>, %arg4: memref<1x4x4096xf32, #tpu.memory_space<vmem>>) attributes {dimension_semantics = [#tpu.dimension_semantics<parallel>], iteration_bounds = array<i64: 2>, scalar_prefetch = 0 : i64, scratch_operands = 0 : i64, tpu.core_type = #tpu.core_type<tc>, window_params = [{transform_indices = @transform_0, window_bounds = array<i64: 1, 8, 4096>}, {pipeline_mode = #tpu.pipeline_mode<synchronous>, transform_indices = @transform_1, window_bounds = array<i64: 4, 8>}, {pipeline_mode = #tpu.pipeline_mode<synchronous>, transform_indices = @transform_2, window_bounds = array<i64: 4, 1>}, {transform_indices = @transform_3, window_bounds = array<i64: 1, 4, 4096>}]} {
    %c0 = arith.constant 0 : index
    %c0_0 = arith.constant 0 : index
    %c0_1 = arith.constant 0 : index
    %0 = vector.load %arg1[%c0, %c0_0, %c0_1] : memref<1x8x4096xf32, #tpu.memory_space<vmem>>, vector<1x8x4096xf32>
    %1 = vector.shape_cast %0 : vector<1x8x4096xf32> to vector<8x4096xf32>
    %c0_2 = arith.constant 0 : index
    %c0_3 = arith.constant 0 : index
    %2 = vector.load %arg2[%c0_2, %c0_3] : memref<4x8xf32, #tpu.memory_space<vmem>>, vector<4x8xf32>
    %cst = arith.constant dense<0.000000e+00> : vector<4x4096xf32>
    %3 = tpu.matmul %2, %1, %cst {dimension_numbers = #tpu.dot_dimension_numbers<[1], [0], [0], [1], [0, 0, 1, 1], [], []>} : vector<4x8xf32>, vector<8x4096xf32>, vector<4x4096xf32> -> vector<4x4096xf32>
    %c0_4 = arith.constant 0 : index
    %c0_5 = arith.constant 0 : index
    %4 = vector.load %arg3[%c0_4, %c0_5] : memref<4x1xf32, #tpu.memory_space<vmem>>, vector<4x1xf32>
    %5 = vector.broadcast %4 : vector<4x1xf32> to vector<4x4096xf32>
    %6 = arith.addf %3, %5 : vector<4x4096xf32>
    %c0_6 = arith.constant 0 : index
    %c0_7 = arith.constant 0 : index
    %c0_8 = arith.constant 0 : index
    %7 = vector.load %arg4[%c0_6, %c0_7, %c0_8] : memref<1x4x4096xf32, #tpu.memory_space<vmem>>, vector<1x4x4096xf32>
    %8 = vector.shape_cast %7 : vector<1x4x4096xf32> to vector<4x4096xf32>
    %9 = vector.shape_cast %6 : vector<4x4096xf32> to vector<1x4x4096xf32>
    tpu.vector_store %arg4[%c0_6, %c0_7, %c0_8], %9 {strides = array<i32>} : memref<1x4x4096xf32, #tpu.memory_space<vmem>>, vector<1x4x4096xf32>,
    return
  }
  func.func @transform_0(%arg0: i32) -> (i32, i32, i32) {
    %c0_i32 = arith.constant 0 : i32
    %c0_i32_0 = arith.constant 0 : i32
    %c0_i32_1 = arith.constant 0 : i32
    return %arg0, %c0_i32, %c0_i32_0 : i32, i32, i32
  }
  func.func @transform_1(%arg0: i32) -> (i32, i32) {
    %c0_i32 = arith.constant 0 : i32
    %c0_i32_0 = arith.constant 0 : i32
    %c0_i32_1 = arith.constant 0 : i32
    return %c0_i32, %c0_i32_0 : i32, i32
  }
  func.func @transform_2(%arg0: i32) -> (i32, i32) {
    %c0_i32 = arith.constant 0 : i32
    %c0_i32_0 = arith.constant 0 : i32
    %c0_i32_1 = arith.constant 0 : i32
    return %c0_i32, %c0_i32_0 : i32, i32
  }
  func.func @transform_3(%arg0: i32) -> (i32, i32, i32) {
    %c0_i32 = arith.constant 0 : i32
    %c0_i32_0 = arith.constant 0 : i32
    %c0_i32_1 = arith.constant 0 : i32
    return %arg0, %c0_i32, %c0_i32_0 : i32, i32, i32
  }
}

</mosaic_0001>

<bundles_post_ra>
// kernel: tpu_custom_call.1
= control target key start
LH: loop header
LB: loop body
LE: loop exit
PB: predicated region body
PF: predicated region fallthrough
CT: control target
= control target key end

     0   :  { %8 = vsyncpa [#allocation3], 0  ;;  %s2039_s0 = inlined_call_operand.hbm [shape: f32[2,8,4096], index: 0, kind: input, shape index: {}]   ;;  %s2040_s1 = inlined_call_operand.vmem [shape: f32[4,8], index: 1, kind: input, shape index: {}]   ;;  %s2041_s2 = inlined_call_operand.vmem [shape: f32[4,1], index: 2, kind: input, shape index: {}]   ;;  %s2042_s3 = inlined_call_operand.hbm [shape: f32[2,4,4096], index: 3, kind: output, shape index: {}]  }
   0x1   :  { %10 = vsyncpa [#allocation3 + $0x1], 0 }
   0x2   :  { %11 = vsyncpa [#allocation4], 0 }
   0x3   :  { %13 = vsyncpa [#allocation4 + $0x1], 0  ;;  %s1734_s12 = smov 0   ;;  %s1736_s13 = smov 0  }
   0x4   :  { %s1738_s14 = smov 0   ;;  %s1740_s15 = smov 0  }
   0x5 LB: > { %s1755_s16 = sadd.s32 4294967295, %s1708_s15   ;;  %s1531_s17 = sadd.s32 4294967294, %s1708_s15   ;;  %s1708_s15 = sphi %s1740_s15, %s2057_s15   ;;  %s1704_s14 = sphi %s1738_s14, %s2056_s14   ;;  %s1700_s13 = sphi %s1736_s13, %s2055_s13   ;;  %s1696_s12 = sphi %s1734_s12, %s2054_s12  }
   0x6   : > { %s1759_s18 = sadd.s32 1, %s1708_s15   ;;  %s26_s19 = sadd.s32 1, %s1704_s14 }
   0x7   : > { %s23_s20 = ssub.s32 %s1708_s15, %s1759_s18  ;;  %p33_p0 = scmp.ne.s32.totalorder %s1704_s14, %s1700_s13 }
   0x8   : > { %p24_p1 = scmp.eq.s32.totalorder %s23_s20, 0  ;;  %p34_p2 = scmp.eq.s32.totalorder %s1708_s15, 0 }
   0x9   : > { %p39_p3 = scmp.ne.s32.totalorder %s1700_s13, %s1696_s12  ;;  %p40_p4 = scmp.eq.s32.totalorder %s1755_s16, 0 }
   0xa   : > { %s1771_s21 = scalar_select %p24_p1, %s1704_s14, %s26_s19  }
   0xb   : > { %p1773_p5 = por %p34_p2, %p33_p0  ;;  %p1777_p6 = por %p40_p4, %p39_p3 }
   0xc   : > { %p105_p7 = scmp.eq.s32.totalorder %s1755_s16, 1  ;;  %p111_p8 = scmp.eq.s32.totalorder %s1531_s17, 1 }
   0xd   : > { %p1575_p10 = scmp.lt.s32.totalorder %s1708_s15, 2  ;;  %s137_s26 = sand.u32 1, %s1704_s14  }
   0xe   : > { %p1784_p11 = por %p105_p7, %p33_p0  ;;  %p1788_p12 = por %p111_p8, %p39_p3 }
   0xf   : > { %s1561_s27 = sshll.u32 %s1708_s15, 12  ;;  %s1534_s28 = sshll.u32 %s137_s26, 8 }
  0x10   : > { %s2046_s24 = scalar_select %p1784_p11, 1, 0 }
  0x11   : > { %s2047_s25 = scalar_select %p1788_p12, 1, 0 }
  0x12   : > { %s1797_s4 = scalar_lea.hbm %s2039_s0, %s1561_s27  ;;  %s141_s5 = scalar_lea.vmem [#allocation2], %s1534_s28 }
  0x13   : > { %s149_s6 = sshll.u32 %s141_s5, 4  ;;  %p1801_p13 = pnand %p1575_p10, %p1773_p5  ;;  %s1805_s6 = int_to_ptr.vmem [resolvable:$true] %s149_s6 }
  0x14   : > { %s138_s8 = scalar_lea.sflag [#allocation3], %s137_s26  ;;  %s1612_s9 = scalar_lea.hbm %s1797_s4, 4096 }
  0x15   : > { %p1613_p2 = scmp.ne.s32.totalorder %s1797_s4, %s1612_s9  ;;  %p1614_p3 = pneg %p1801_p13 }
  0x16   : > { %s1617_s17 = scalar_lea.hbm %s2039_s0, 8192  ;;  %p1618_p5 = scmp.lt.u32.totalorder %s1797_s4, %s2039_s0 }
  0x17   : > { %p1615_p4 = pnand %p1614_p3, %p1613_p2  ;;  %p1619_p8 = scmp.lt.u32.totalorder %s1617_s17, %s1612_s9 }
  0x18   : > { %p1621_p9 = scmp.lt.u32.totalorder %s1612_s9, %s1797_s4 }
  0x19   : > { %p1616_p7 = pneg %p1615_p4  ;;  %p1620_p10 = por %p1619_p8, %p1618_p5 }
  0x1b   : > { %p1622_p0 = por %p1621_p9, %p1620_p10 }
  0x1d   : > { %p1623_p1 = pnand %p1622_p0, %p1616_p7 }
  0x1f   : > { %1626 = shalt.err (!%p1623_p1)
}
  0x20   : > { %s1627_s22 = scalar_lea.vmem %s1805_s6, 4096  ;;  %s1710_s26 = smov [#allocation2]  }
  0x21   : > { %p1628_p2 = scmp.ne.s32.totalorder %s1805_s6, %s1627_s22  ;;  %s1632_s27 = sshll.u32 %s1710_s26, 4  ;;  %s1633_s27 = int_to_ptr.vmem [resolvable:$false] %s1632_s27 }
  0x22   : > { %s1634_s28 = scalar_lea.vmem %s1633_s27, 8192  ;;  %p1635_p11 = scmp.lt.s32.totalorder %s1805_s6, %s1633_s27 }
  0x23   : > { %p1630_p4 = pnand %p1628_p2, %p1614_p3  ;;  %p1636_p5 = scmp.lt.s32.totalorder %s1634_s28, %s1627_s22 }
  0x25   : > { %p1631_p12 = pneg %p1630_p4  ;;  %p1637_p8 = por %p1636_p5, %p1635_p11 }
  0x27   : > { %p1638_p9 = pnand %p1637_p8, %p1631_p12 }
  0x29   : > { %1641 = shalt.err (!%p1638_p9)
}
  0x2a   : > { %1570 = dma.hbm_to_vmem [thread:$0]  (!%p1801_p13), %s1797_s4, 4096, %s1805_s6, %s138_s8  }
  0x2b   : > { %p2049_p0 = scmp.lt.s32.totalorder %s1708_s15, 3  ;;  %p2050_p1 = scmp.ge.s32.totalorder %s1708_s15, 1 }
  0x2d   : > { %p155_p3 = pnand %p2050_p1, %p2049_p0 }
  0x2e   : > { %s1839_s29 = sand.u32 (!%p155_p3), 1, %s1700_s13  }
  0x2f   : > { %158 = sbr.rel (%p155_p3) target bundleno = 319 (0x13f), region = 32  ;;  %s1538_s30 = sshll.u32 (!%p155_p3), %s1839_s29, 8 }
  0x30   : > { %s161_s5 = scalar_lea.sflag (!%p155_p3), [#allocation3], %s1839_s29  ;;  %s1843_s9 = scalar_lea.vmem (!%p155_p3), [#allocation2], %s1538_s30 }
  0x36   : > { %1687 = dma.done.wait (%p1777_p6), %s161_s5, 4096  }
  0x37   : > { %1689 = vsyncadd (%p1777_p6), %s161_s5, 4294963200  ;;  %v1711_v0 = vmov 0.0   ;;  %v1712_v1 = vmov 0   ;;  %v188_v2 = vld [vmem:[%s1843_s9 + $0x8] sm:$0xff]  ;;  %v190_v3 = vld [vmem:[%s1843_s9 + $0x18] sm:$0xff]  ;;  %vm226_vm0 = vcmask 64512  }
  0x38   : > { %294 = vmatprep.mubr.f32.mxu0 %v1711_v0  ;;  %365 = vmatprep.mubr.f32.mxu1 %v1711_v0  ;;  %v187_v4 = vld [vmem:[%s1843_s9] sm:$0xff]  ;;  %v189_v5 = vld [vmem:[%s1843_s9 + $0x10] sm:$0xff]  ;;  %v192_v7 = vld [vmem:[%s1843_s9 + $0x28] sm:$0xff]  ;;  %s1539_s8 = sshll.u32 %s1839_s29, 7  ;;  %s1562_s11 = sshll.u32 %s1755_s16, 11 }
  0x39   : > { %1611 = vset.pattern.permute.xlu0 %v1712_v1  ;;  %230 = vmatprep.subr.mxu0 %v188_v2  ;;  %v1858_v6 = vld [vmem:[%s2040_s1] sm:$0xf]  ;;  %v194_v8 = vld [vmem:[%s1843_s9 + $0x38] sm:$0xff]  ;;  %v193_v10 = vld [vmem:[%s1843_s9 + $0x30] sm:$0xff]  ;;  %s1946_s10 = scalar_lea.vmem [#allocation5], %s1539_s8  ;;  %s1993_s22 = scalar_lea.hbm %s2042_s3, %s1562_s11 }
  0x3a   : > { %301 = vmatprep.subr.mxu1 %v190_v3  ;;  %231 = vmatpush1.msra.mxu0 %v187_v4  ;;  %v191_v9 = vld [vmem:[%s1843_s9 + $0x20] sm:$0xff]  ;;  %v196_v11 = vld [vmem:[%s1843_s9 + $0x48] sm:$0xff]  ;;  %v198_v12 = vld [vmem:[%s1843_s9 + $0x58] sm:$0xff]  ;;  %s1461_s17 = sshll.u32 %s1946_s10, 4  ;;  %s1447_s16 = scalar_lea.sflag [#allocation4], %s1839_s29  ;;  %s1995_s17 = int_to_ptr.vmem [resolvable:$true] %s1461_s17 }
  0x3b   : > { %302 = vmatpush1.msra.mxu1 %v189_v5  ;;  %1540 = vmatmul.mubr.msk.f32.vlgmr.msra.gmra.mrb[0].mxu0 %vm226_vm0, %v1858_v6  ;;  %v195_v13 = vld [vmem:[%s1843_s9 + $0x40] sm:$0xff]  ;;  %v197_v14 = vld [vmem:[%s1843_s9 + $0x50] sm:$0xff]  ;;  %v200_v15 = vld [vmem:[%s1843_s9 + $0x68] sm:$0xff]  ;;  %s1642_s26 = scalar_lea.vmem %s1995_s17, 2048  ;;  %p2051_p11 = scmp.ne.s32.totalorder %s2046_s24, 0 }
  0x3c   : > { %1541 = vmatmul.mubr.msk.f32.vlgmr.msra.gmra.mrb[0].mxu1 %vm226_vm0, %v1858_v6  ;;  %372 = vmatprep.subr.mxu0 %v192_v7  ;;  %v202_v16 = vld [vmem:[%s1843_s9 + $0x78] sm:$0xff]  ;;  %v199_v17 = vld [vmem:[%s1843_s9 + $0x60] sm:$0xff]  ;;  %v201_v18 = vld [vmem:[%s1843_s9 + $0x70] sm:$0xff]  ;;  %p1643_p6 = scmp.ne.s32.totalorder %s1995_s17, %s1642_s26  ;;  %s1713_s27 = smov [#allocation5]  }
  0x3d   : > { %443 = vmatprep.subr.mxu1 %v194_v8  ;;  %373 = vmatpush1.msra.mxu0 %v191_v9  ;;  %v204_v19 = vld [vmem:[%s1843_s9 + $0x88] sm:$0xff]  ;;  %v206_v20 = vld [vmem:[%s1843_s9 + $0x98] sm:$0xff]  ;;  %v203_v21 = vld [vmem:[%s1843_s9 + $0x80] sm:$0xff]  ;;  %s1646_s28 = sshll.u32 %s1713_s27, 4  ;;  %s1647_s28 = int_to_ptr.vmem [resolvable:$false] %s1646_s28 }
  0x3e   : > { %444 = vmatpush1.msra.mxu1 %v193_v10  ;;  %436 = vmatprep.mubr.f32.mxu0 %v1711_v0  ;;  %v205_v22 = vld [vmem:[%s1843_s9 + $0x90] sm:$0xff]  ;;  %v208_v23 = vld [vmem:[%s1843_s9 + $0xa8] sm:$0xff]  ;;  %v210_v24 = vld [vmem:[%s1843_s9 + $0xb8] sm:$0xff]  ;;  %p1644_p12 = pnand %p1643_p6, %p2051_p11  ;;  %s1648_s30 = scalar_lea.vmem %s1647_s28, 4096 }
  0x3f   : > { %507 = vmatprep.mubr.f32.mxu1 %v1711_v0  ;;  %1542 = vmatmul.mubr.msk.f32.vlgmr.msra.gmra.mrb[2].mxu0 %vm226_vm0, %v1858_v6  ;;  %v207_v25 = vld [vmem:[%s1843_s9 + $0xa0] sm:$0xff]  ;;  %v209_v26 = vld [vmem:[%s1843_s9 + $0xb0] sm:$0xff]  ;;  %v212_v27 = vld [vmem:[%s1843_s9 + $0xc8] sm:$0xff]  ;;  %p1649_p7 = scmp.lt.s32.totalorder %s1995_s17, %s1647_s28  ;;  %p1650_p10 = scmp.lt.s32.totalorder %s1648_s30, %s1642_s26 }
  0x40   : > { %1543 = vmatmul.mubr.msk.f32.vlgmr.msra.gmra.mrb[2].mxu1 %vm226_vm0, %v1858_v6  ;;  %514 = vmatprep.subr.mxu0 %v196_v11  ;;  %v214_v28 = vld [vmem:[%s1843_s9 + $0xd8] sm:$0xff]  ;;  %v211_v29 = vld [vmem:[%s1843_s9 + $0xc0] sm:$0xff]  ;;  %v213_v30 = vld [vmem:[%s1843_s9 + $0xd0] sm:$0xff]  ;;  %p1645_p13 = pneg %p1644_p12 }
  0x41   : > { %585 = vmatprep.subr.mxu1 %v198_v12  ;;  %515 = vmatpush1.msra.mxu0 %v195_v13  ;;  %v216_v31 = vld [vmem:[%s1843_s9 + $0xe8] sm:$0xff]  ;;  %v218_v32 = vld [vmem:[%s1843_s9 + $0xf8] sm:$0xff]  ;;  %v215_v33 = vld [vmem:[%s1843_s9 + $0xe0] sm:$0xff]  ;;  %p1651_p2 = por %p1650_p10, %p1649_p7 }
  0x42   : > { %586 = vmatpush1.msra.mxu1 %v197_v14  ;;  %578 = vmatprep.mubr.f32.mxu0 %v1711_v0  ;;  %v217_v34 = vld [vmem:[%s1843_s9 + $0xf0] sm:$0xff]  ;;  %v220_v35 = vld [vmem:[%s2041_s2] sm:$0xf] }
  0x43   : > { %649 = vmatprep.mubr.f32.mxu1 %v1711_v0  ;;  %1544 = vmatmul.mubr.msk.f32.vlgmr.msra.gmra.mrb[4].mxu0 %vm226_vm0, %v1858_v6  ;;  %p1652_p4 = pnand %p1651_p2, %p1645_p13 }
  0x44   : > { %1545 = vmatmul.mubr.msk.f32.vlgmr.msra.gmra.mrb[4].mxu1 %vm226_vm0, %v1858_v6  ;;  %656 = vmatprep.subr.mxu0 %v200_v15 }
  0x45   : > { %727 = vmatprep.subr.mxu1 %v202_v16  ;;  %657 = vmatpush1.msra.mxu0 %v199_v17 }
  0x46   : > { %728 = vmatpush1.msra.mxu1 %v201_v18  ;;  %720 = vmatprep.mubr.f32.mxu0 %v1711_v0 }
  0x47   : > { %791 = vmatprep.mubr.f32.mxu1 %v1711_v0  ;;  %1546 = vmatmul.mubr.msk.f32.vlgmr.msra.gmra.mrb[6].mxu0 %vm226_vm0, %v1858_v6 }
  0x48   : > { %1547 = vmatmul.mubr.msk.f32.vlgmr.msra.gmra.mrb[6].mxu1 %vm226_vm0, %v1858_v6  ;;  %798 = vmatprep.subr.mxu0 %v204_v19 }
  0x49   : > { %869 = vmatprep.subr.mxu1 %v206_v20  ;;  %799 = vmatpush1.msra.mxu0 %v203_v21 }
  0x4a   : > { %870 = vmatpush1.msra.mxu1 %v205_v22  ;;  %862 = vmatprep.mubr.f32.mxu0 %v1711_v0 }
  0x4b   : > { %933 = vmatprep.mubr.f32.mxu1 %v1711_v0  ;;  %1548 = vmatmul.mubr.msk.f32.vlgmr.msra.gmra.mrb[8].mxu0 %vm226_vm0, %v1858_v6 }
  0x4c   : > { %1549 = vmatmul.mubr.msk.f32.vlgmr.msra.gmra.mrb[8].mxu1 %vm226_vm0, %v1858_v6  ;;  %940 = vmatprep.subr.mxu0 %v208_v23 }
  0x4d   : > { %1011 = vmatprep.subr.mxu1 %v210_v24  ;;  %941 = vmatpush1.msra.mxu0 %v207_v25 }
  0x4e   : > { %1012 = vmatpush1.msra.mxu1 %v209_v26  ;;  %1004 = vmatprep.mubr.f32.mxu0 %v1711_v0 }
  0x4f   : > { %1075 = vmatprep.mubr.f32.mxu1 %v1711_v0  ;;  %1550 = vmatmul.mubr.msk.f32.vlgmr.msra.gmra.mrb[10].mxu0 %vm226_vm0, %v1858_v6 }
  0x50   : > { %1551 = vmatmul.mubr.msk.f32.vlgmr.msra.gmra.mrb[10].mxu1 %vm226_vm0, %v1858_v6  ;;  %1082 = vmatprep.subr.mxu0 %v212_v27 }
  0x51   : > { %1153 = vmatprep.subr.mxu1 %v214_v28  ;;  %1083 = vmatpush1.msra.mxu0 %v211_v29 }
  0x52   : > { %1154 = vmatpush1.msra.mxu1 %v213_v30  ;;  %1146 = vmatprep.mubr.f32.mxu0 %v1711_v0 }
  0x53   : > { %1217 = vmatprep.mubr.f32.mxu1 %v1711_v0  ;;  %1552 = vmatmul.mubr.msk.f32.vlgmr.msra.gmra.mrb[12].mxu0 %vm226_vm0, %v1858_v6 }
  0x54   : > { %1553 = vmatmul.mubr.msk.f32.vlgmr.msra.gmra.mrb[12].mxu1 %vm226_vm0, %v1858_v6  ;;  %1224 = vmatprep.subr.mxu0 %v216_v31 }
  0x55   : > { %1295 = vmatprep.subr.mxu1 %v218_v32  ;;  %1225 = vmatpush1.msra.mxu0 %v215_v33 }
  0x56   : > { %1296 = vmatpush1.msra.mxu1 %v217_v34  ;;  %1288 = vmatprep.mubr.f32.mxu0 %v1711_v0 }
  0x57   : > { %1359 = vmatprep.mubr.f32.mxu1 %v1711_v0  ;;  %1554 = vmatmul.mubr.msk.f32.vlgmr.msra.gmra.mrb[14].mxu0 %vm226_vm0, %v1858_v6 }
  0x58   : > { %1555 = vmatmul.mubr.msk.f32.vlgmr.msra.gmra.mrb[14].mxu1 %vm226_vm0, %v1858_v6  ;;  %223 = vperm.xlu0 %1611, %v220_v35  }
  0xd7   : > { %v1937_v36 = vpop.permute.xlu0 %223 }
 0x10e   : > { %v296_v37 = vpop.f32.mrb[0].mxu0 }
 0x10f   : > { %v367_v38 = vpop.f32.mrb[0].mxu1  ;;  %v297_v39 = vadd.f32 %v296_v37, %v1937_v36  ;;  %v298_v40 = vpop.f32.mrb[1].mxu0 }
 0x110   : > { %v368_v41 = vadd.f32 %v367_v38, %v1937_v36  ;;  %v369_v42 = vpop.f32.mrb[1].mxu1  ;;  %v299_v43 = vadd.f32 %v298_v40, %v1937_v36 }
 0x111   : > { %v370_v44 = vadd.f32 %v369_v42, %v1937_v36 }
 0x112   : > { %v1398_v45 = vcombine.low %v297_v39, %v299_v43  ;;  %v438_v47 = vpop.f32.mrb[2].mxu0 }
 0x113   : > { %v1399_v46 = vcombine.low %v368_v41, %v370_v44  ;;  %v509_v48 = vpop.f32.mrb[2].mxu1  ;;  %v439_v49 = vadd.f32 %v438_v47, %v1937_v36  ;;  %v440_v51 = vpop.f32.mrb[3].mxu0 }
 0x114   : > { %v510_v50 = vadd.f32 %v509_v48, %v1937_v36  ;;  %v511_v52 = vpop.f32.mrb[3].mxu1  ;;  %1430 = vst [vmem:[%s1946_s10] sm:$0xff] %v1398_v45  ;;  %v441_v53 = vadd.f32 %v440_v51, %v1937_v36 }
 0x115   : > { %1431 = vst [vmem:[%s1946_s10 + $0x8] sm:$0xff] %v1399_v46  ;;  %v512_v54 = vadd.f32 %v511_v52, %v1937_v36 }
 0x116   : > { %v1400_v55 = vcombine.low %v439_v49, %v441_v53  ;;  %v580_v57 = vpop.f32.mrb[4].mxu0 }
 0x117   : > { %v1401_v56 = vcombine.low %v510_v50, %v512_v54  ;;  %v651_v58 = vpop.f32.mrb[4].mxu1  ;;  %v581_v59 = vadd.f32 %v580_v57, %v1937_v36  ;;  %v582_v61 = vpop.f32.mrb[5].mxu0 }
 0x118   : > { %v652_v60 = vadd.f32 %v651_v58, %v1937_v36  ;;  %v653_v62 = vpop.f32.mrb[5].mxu1  ;;  %1432 = vst [vmem:[%s1946_s10 + $0x10] sm:$0xff] %v1400_v55  ;;  %v583_v63 = vadd.f32 %v582_v61, %v1937_v36 }
 0x119   : > { %1433 = vst [vmem:[%s1946_s10 + $0x18] sm:$0xff] %v1401_v56  ;;  %v654_v0 = vadd.f32 %v653_v62, %v1937_v36 }
 0x11a   : > { %v1402_v1 = vcombine.low %v581_v59, %v583_v63  ;;  %v722_v3 = vpop.f32.mrb[6].mxu0 }
 0x11b   : > { %v1403_v2 = vcombine.low %v652_v60, %v654_v0  ;;  %v793_v4 = vpop.f32.mrb[6].mxu1  ;;  %v723_v5 = vadd.f32 %v722_v3, %v1937_v36  ;;  %v724_v7 = vpop.f32.mrb[7].mxu0 }
 0x11c   : > { %v794_v6 = vadd.f32 %v793_v4, %v1937_v36  ;;  %v795_v8 = vpop.f32.mrb[7].mxu1  ;;  %1434 = vst [vmem:[%s1946_s10 + $0x20] sm:$0xff] %v1402_v1  ;;  %v725_v9 = vadd.f32 %v724_v7, %v1937_v36 }
 0x11d   : > { %1435 = vst [vmem:[%s1946_s10 + $0x28] sm:$0xff] %v1403_v2  ;;  %v796_v10 = vadd.f32 %v795_v8, %v1937_v36 }
 0x11e   : > { %v1404_v11 = vcombine.low %v723_v5, %v725_v9  ;;  %v864_v13 = vpop.f32.mrb[8].mxu0 }
 0x11f   : > { %v1405_v12 = vcombine.low %v794_v6, %v796_v10  ;;  %v935_v14 = vpop.f32.mrb[8].mxu1  ;;  %v865_v15 = vadd.f32 %v864_v13, %v1937_v36  ;;  %v866_v17 = vpop.f32.mrb[9].mxu0 }
 0x120   : > { %v936_v16 = vadd.f32 %v935_v14, %v1937_v36  ;;  %v937_v18 = vpop.f32.mrb[9].mxu1  ;;  %1436 = vst [vmem:[%s1946_s10 + $0x30] sm:$0xff] %v1404_v11  ;;  %v867_v19 = vadd.f32 %v866_v17, %v1937_v36 }
 0x121   : > { %1437 = vst [vmem:[%s1946_s10 + $0x38] sm:$0xff] %v1405_v12  ;;  %v938_v20 = vadd.f32 %v937_v18, %v1937_v36 }
 0x122   : > { %v1406_v21 = vcombine.low %v865_v15, %v867_v19  ;;  %v1006_v23 = vpop.f32.mrb[10].mxu0 }
 0x123   : > { %v1407_v22 = vcombine.low %v936_v16, %v938_v20  ;;  %v1077_v24 = vpop.f32.mrb[10].mxu1  ;;  %v1007_v25 = vadd.f32 %v1006_v23, %v1937_v36  ;;  %v1008_v27 = vpop.f32.mrb[11].mxu0 }
 0x124   : > { %v1078_v26 = vadd.f32 %v1077_v24, %v1937_v36  ;;  %v1079_v28 = vpop.f32.mrb[11].mxu1  ;;  %1438 = vst [vmem:[%s1946_s10 + $0x40] sm:$0xff] %v1406_v21  ;;  %v1009_v29 = vadd.f32 %v1008_v27, %v1937_v36 }
 0x125   : > { %1439 = vst [vmem:[%s1946_s10 + $0x48] sm:$0xff] %v1407_v22  ;;  %v1080_v30 = vadd.f32 %v1079_v28, %v1937_v36 }
 0x126   : > { %v1408_v31 = vcombine.low %v1007_v25, %v1009_v29  ;;  %v1148_v33 = vpop.f32.mrb[12].mxu0 }
 0x127   : > { %v1409_v32 = vcombine.low %v1078_v26, %v1080_v30  ;;  %v1219_v34 = vpop.f32.mrb[12].mxu1  ;;  %v1149_v35 = vadd.f32 %v1148_v33, %v1937_v36  ;;  %v1150_v38 = vpop.f32.mrb[13].mxu0 }
 0x128   : > { %v1220_v37 = vadd.f32 %v1219_v34, %v1937_v36  ;;  %v1221_v39 = vpop.f32.mrb[13].mxu1  ;;  %1440 = vst [vmem:[%s1946_s10 + $0x50] sm:$0xff] %v1408_v31  ;;  %v1151_v40 = vadd.f32 %v1150_v38, %v1937_v36 }
 0x129   : > { %1441 = vst [vmem:[%s1946_s10 + $0x58] sm:$0xff] %v1409_v32  ;;  %v1222_v41 = vadd.f32 %v1221_v39, %v1937_v36 }
 0x12a   : > { %v1410_v42 = vcombine.low %v1149_v35, %v1151_v40  ;;  %v1290_v44 = vpop.f32.mrb[14].mxu0 }
 0x12b   : > { %v1411_v43 = vcombine.low %v1220_v37, %v1222_v41  ;;  %v1361_v45 = vpop.f32.mrb[14].mxu1  ;;  %v1291_v46 = vadd.f32 %v1290_v44, %v1937_v36  ;;  %v1292_v48 = vpop.f32.mrb[15].mxu0 }
 0x12c   : > { %v1362_v47 = vadd.f32 %v1361_v45, %v1937_v36  ;;  %v1363_v49 = vpop.f32.mrb[15].mxu1  ;;  %1442 = vst [vmem:[%s1946_s10 + $0x60] sm:$0xff] %v1410_v42  ;;  %v1293_v50 = vadd.f32 %v1292_v48, %v1937_v36 }
 0x12d   : > { %1443 = vst [vmem:[%s1946_s10 + $0x68] sm:$0xff] %v1411_v43  ;;  %v1364_v51 = vadd.f32 %v1363_v49, %v1937_v36 }
 0x12e   : > { %v1412_v52 = vcombine.low %v1291_v46, %v1293_v50 }
 0x12f   : > { %v1413_v53 = vcombine.low %v1362_v47, %v1364_v51 }
 0x130   : > { %1444 = vst [vmem:[%s1946_s10 + $0x70] sm:$0xff] %v1412_v52 }
 0x131   : > { %1445 = vst [vmem:[%s1946_s10 + $0x78] sm:$0xff] %v1413_v53 }
 0x132   : > { %1655 = shalt.err (!%p1652_p4)
}
 0x133   : > { %s1656_s29 = scalar_lea.hbm %s1993_s22, 2048  ;;  %s1660_s23 = scalar_lea.hbm %s2042_s3, 4096 }
 0x134   : > { %p1657_p5 = scmp.ne.s32.totalorder %s1993_s22, %s1656_s29  ;;  %p1661_p0 = scmp.lt.u32.totalorder %s1993_s22, %s2042_s3 }
 0x135   : > { %p1662_p1 = scmp.lt.u32.totalorder %s1660_s23, %s1656_s29  ;;  %p1664_p6 = scmp.lt.u32.totalorder %s1656_s29, %s1993_s22 }
 0x136   : > { %p1658_p8 = pnand %p1657_p5, %p2051_p11 }
 0x137   : > { %p1663_p3 = por %p1662_p1, %p1661_p0 }
 0x138   : > { %p1659_p9 = pneg %p1658_p8 }
 0x139   : > { %p1665_p12 = por %p1664_p6, %p1663_p3 }
 0x13b   : > { %p1666_p13 = pnand %p1665_p12, %p1659_p9 }
 0x13d   : > { %1669 = shalt.err (!%p1666_p13)
}
 0x13e   : > { %1565 = dma.vmem_to_hbm [thread:$0]  (%p2051_p11), %s1995_s17, 2048, %s1993_s22, %s1447_s16  }
 0x13f PF: > { %s1473_s7 = sand.u32 1, %s1696_s12   ;;  %p2052_p7 = scmp.ne.s32.totalorder %s2047_s25, 0 }
 0x140   : > { %p2053_p10 = scmp.ge.s32.totalorder %s1708_s15, 2  ;;  %s1474_s8 = scalar_lea.sflag [#allocation4], %s1473_s7 }
 0x142   : > { %p1572_p2 = pnand %p2053_p10, %p2052_p7 }
 0x144   : > { %1691 = dma.done.wait (!%p1572_p2), %s1474_s8, 2048  }
 0x145   : > { %1693 = vsyncadd (!%p1572_p2), %s1474_s8, 4294965248  ;;  %p16_p4 = scmp.ge.s32.totalorder %s1759_s18, 4   ;;  %s2054_s12 = smov %s1700_s13 }
 0x146   : > { %s2055_s13 = smov %s1704_s14  ;;  %s2056_s14 = smov %s1771_s21 }
 0x147   : > { %s2057_s15 = smov %s1759_s18  ;;  %18 = sbr.rel (!%p16_p4) target bundleno = 5 (0x5), region = 77 }
 0x14e   :  { %1479 = vsyncpa [#allocation3], 1 }
 0x14f   :  { %1481 = vsyncpa [#allocation3 + $0x1], 1 }
 0x150   :  { %1482 = vsyncpa [#allocation4], 1 }
 0x151   :  { %1484 = vsyncpa [#allocation4 + $0x1], 1 }

</bundles_post_ra>
